<compile_context>
chip_gen: v7x
topology: tpu7x:2x2x1
jax: 0.10.0
libtpu: 0.0.40
codegen_flags: <defaults>
</compile_context>

<pallas_src>
import functools

import jax
import jax.numpy as jnp
from jax.experimental import pallas as pl
from jax.experimental.pallas import tpu as pltpu

LN_EPS = 1e-5  # matches torch.nn.LayerNorm default


def _ft_head_kernel(x_ref, gamma_ref, beta_ref, w_ref, bias_ref, o_ref,
                    *, is_classification: bool):
    """LayerNorm -> ReLU -> Linear -> (Sigmoid | Identity), all in VMEM."""
    x = x_ref[...].astype(jnp.float32)                       # (bn, Fin)
    fin = x.shape[-1]

    # Fused LayerNorm statistics: one data pass, two XLU lane reductions.
    s = jnp.sum(x, axis=-1, keepdims=True)                    # (bn, 1)
    ss = jnp.sum(x * x, axis=-1, keepdims=True)                # (bn, 1)
    mean = s * (1.0 / fin)
    var = jnp.maximum(ss * (1.0 / fin) - mean * mean, 0.0)     # biased var
    inv = jax.lax.rsqrt(var + LN_EPS)                          # (bn, 1)

    # Read params once into locals (no re-materialized broadcasts).
    gamma = gamma_ref[...].astype(jnp.float32)                 # (1, Fin)
    beta = beta_ref[...].astype(jnp.float32)                   # (1, Fin)

    # Single fused scale/shift:  h = x * (gamma*inv) + (beta - mean*gamma*inv)
    scale = gamma * inv                                        # (bn, Fin)
    h = x * scale + (beta - mean * scale)

    # ReLU.
    h = jnp.maximum(h, 0.0)

    # Linear: (bn, Fin) @ (Fin, Fout) + (1, Fout)  -> MXU.
    w = w_ref[...].astype(jnp.float32)
    y = jnp.dot(h, w, preferred_element_type=jnp.float32)
    y = y + bias_ref[...].astype(jnp.float32)

    # Output activation.
    if is_classification:
        y = jax.nn.sigmoid(y)

    o_ref[...] = y.astype(o_ref.dtype)


def _round_up(x: int, m: int) -> int:
    return ((x + m - 1) // m) * m


def _choose_block_n(n: int, fin: int, itemsize: int) -> int:
    """Pick a row tile: ~2 MiB per x buffer, <=1024 rows, sublane/MXU aligned.

    2 MiB per buffer * 2 (double-buffering) + tiny weight/param/output tiles
    fits the v5e 16 MiB scoped-VMEM default and leaves ample headroom on
    v7x's 64 MiB physical VMEM, while 512+ row tiles are enough to sit near
    the HBM streaming roofline.
    """
    budget_bytes = 2 * 1024 * 1024
    bn = budget_bytes // max(fin * itemsize, 1)
    bn = max(8, min(bn, 1024))
    if bn >= 256:
        bn = (bn // 256) * 256          # MXU pass height (v6e/v7x); also /8
    else:
        bn = (bn // 8) * 8              # f32 sublane alignment
    bn = min(bn, _round_up(n, 8))       # don't tile wider than the batch
    return max(8, bn)


def ft_prediction_head(x, gamma, beta, weight, bias, *,
                       is_classification: bool = True, block_n: int | None = None):
    """Pallas implementation of FTPredictionHead.forward.

    Args:
      x:      (N, in_features) feature vectors (any float dtype; bf16 OK).
      gamma:  (in_features,)   LayerNorm weight.
      beta:   (in_features,)   LayerNorm bias.
      weight: (out_features, in_features)  nn.Linear weight (PyTorch layout).
      bias:   (out_features,)  nn.Linear bias.
    Returns:
      (N, out_features) in x.dtype.
    """
    n, fin = x.shape
    fout, fin_w = weight.shape
    assert fin == fin_w

    if block_n is None:
        block_n = _choose_block_n(n, fin, jnp.dtype(x.dtype).itemsize)
    else:
        block_n = max(8, _round_up(block_n, 8))   # satisfy (8,128) tiling rule

    # Ragged batches: pad rows up to a multiple of block_n, slice afterwards.
    n_pad = _round_up(n, block_n)
    x_in = x if n_pad == n else jnp.pad(x, ((0, n_pad - n), (0, 0)))

    # Glue only (reshape/transpose) — keep native dtypes; casts happen in-kernel.
    gamma2 = gamma.reshape(1, fin)
    beta2 = beta.reshape(1, fin)
    w_t = jnp.transpose(weight)                   # (Fin, Fout)
    bias2 = bias.reshape(1, fout)

    kernel = functools.partial(_ft_head_kernel, is_classification=is_classification)

    out = pl.pallas_call(
        kernel,
        out_shape=jax.ShapeDtypeStruct((n_pad, fout), x.dtype),
        grid_spec=pltpu.PrefetchScalarGridSpec(
            num_scalar_prefetch=0,
            grid=(n_pad // block_n,),
            in_specs=[
                pl.BlockSpec((block_n, fin), lambda i: (i, 0)),   # x row tile
                pl.BlockSpec((1, fin), lambda i: (0, 0)),         # gamma
                pl.BlockSpec((1, fin), lambda i: (0, 0)),         # beta
                pl.BlockSpec((fin, fout), lambda i: (0, 0)),      # W^T
                pl.BlockSpec((1, fout), lambda i: (0, 0)),        # bias
            ],
            out_specs=pl.BlockSpec((block_n, fout), lambda i: (i, 0)),
        ),
        compiler_params=pltpu.CompilerParams(
            dimension_semantics=("parallel",),   # row tiles independent -> megacore
        ),
    )(x_in, gamma2, beta2, w_t, bias2)

    return out if n_pad == n else out[:n]


def _reference(x, gamma, beta, weight, bias, is_classification=True):
    """Pure-JAX reference mirroring the PyTorch module."""
    xf = x.astype(jnp.float32)
    mean = jnp.mean(xf, axis=-1, keepdims=True)
    var = jnp.mean((xf - mean) ** 2, axis=-1, keepdims=True)
    h = (xf - mean) / jnp.sqrt(var + LN_EPS) * gamma.astype(jnp.float32) \
        + beta.astype(jnp.float32)
    h = jnp.maximum(h, 0.0)
    y = h @ weight.T.astype(jnp.float32) + bias.astype(jnp.float32)
    if is_classification:
        y = jax.nn.sigmoid(y)
    return y.astype(x.dtype)


if __name__ == "__main__":
    key = jax.random.PRNGKey(0)

    # --- Test 1: small shapes matching the module's forward (classification). ---
    N, IN_FEATURES, OUT_FEATURES = 8, 32, 4
    kx, kw, kb = jax.random.split(key, 3)

    x = jax.random.normal(kx, (N, IN_FEATURES), dtype=jnp.float32)
    gamma = jnp.ones((IN_FEATURES,), dtype=jnp.float32)          # LayerNorm weight
    beta = jnp.zeros((IN_FEATURES,), dtype=jnp.float32)          # LayerNorm bias
    bound = 1.0 / (IN_FEATURES ** 0.5)                           # nn.Linear init range
    weight = jax.random.uniform(kw, (OUT_FEATURES, IN_FEATURES),
                                minval=-bound, maxval=bound, dtype=jnp.float32)
    bias = jax.random.uniform(kb, (OUT_FEATURES,),
                              minval=-bound, maxval=bound, dtype=jnp.float32)

    out = ft_prediction_head(x, gamma, beta, weight, bias, is_classification=True)
    out = jax.block_until_ready(out)
    ref = _reference(x, gamma, beta, weight, bias, is_classification=True)
    assert out.shape == (N, OUT_FEATURES)
    assert jnp.allclose(out, ref, atol=2e-5, rtol=1e-5), "mismatch vs reference (test 1)"

    # --- Test 2: ragged batch (exercises padding + multi-step grid) + Identity head. ---
    N2, IN2, OUT2 = 300, 128, 4
    k2x, k2w, k2b, k2g, k2be = jax.random.split(jax.random.PRNGKey(1), 5)
    x2 = jax.random.normal(k2x, (N2, IN2), dtype=jnp.float32)
    gamma2 = 1.0 + 0.1 * jax.random.normal(k2g, (IN2,), dtype=jnp.float32)
    beta2 = 0.1 * jax.random.normal(k2be, (IN2,), dtype=jnp.float32)
    bound2 = 1.0 / (IN2 ** 0.5)
    weight2 = jax.random.uniform(k2w, (OUT2, IN2), minval=-bound2, maxval=bound2,
                                 dtype=jnp.float32)
    bias2 = jax.random.uniform(k2b, (OUT2,), minval=-bound2, maxval=bound2,
                               dtype=jnp.float32)

    out2 = ft_prediction_head(x2, gamma2, beta2, weight2, bias2,
                              is_classification=False, block_n=128)
    out2 = jax.block_until_ready(out2)
    ref2 = _reference(x2, gamma2, beta2, weight2, bias2, is_classification=False)
    assert out2.shape == (N2, OUT2)
    assert jnp.allclose(out2, ref2, atol=2e-4, rtol=1e-4), "mismatch vs reference (test 2)"

    print("KERNEL_OK")
</pallas_src>

<mosaic_0001>
module attributes {stable_mosaic.version = 11 : i64} {
  func.func @_ft_head_kernel(%arg0: i32, %arg1: memref<8x32xf32, #tpu.memory_space<vmem>>, %arg2: memref<1x32xf32, #tpu.memory_space<vmem>>, %arg3: memref<1x32xf32, #tpu.memory_space<vmem>>, %arg4: memref<32x4xf32, #tpu.memory_space<vmem>>, %arg5: memref<1x4xf32, #tpu.memory_space<vmem>>, %arg6: memref<8x4xf32, #tpu.memory_space<vmem>>) attributes {dimension_semantics = [#tpu.dimension_semantics<parallel>], iteration_bounds = array<i64: 1>, scalar_prefetch = 0 : i64, scratch_operands = 0 : i64, tpu.core_type = #tpu.core_type<tc>, window_params = [{transform_indices = @transform_0, window_bounds = array<i64: 8, 32>}, {pipeline_mode = #tpu.pipeline_mode<synchronous>, transform_indices = @transform_1, window_bounds = array<i64: 1, 32>}, {pipeline_mode = #tpu.pipeline_mode<synchronous>, transform_indices = @transform_2, window_bounds = array<i64: 1, 32>}, {pipeline_mode = #tpu.pipeline_mode<synchronous>, transform_indices = @transform_3, window_bounds = array<i64: 32, 4>}, {pipeline_mode = #tpu.pipeline_mode<synchronous>, transform_indices = @transform_4, window_bounds = array<i64: 1, 4>}, {transform_indices = @transform_5, window_bounds = array<i64: 8, 4>}]} {
    %c0 = arith.constant 0 : index
    %c0_0 = arith.constant 0 : index
    %0 = vector.load %arg1[%c0, %c0_0] : memref<8x32xf32, #tpu.memory_space<vmem>>, vector<8x32xf32>
    %cst = arith.constant dense<0.000000e+00> : vector<8xf32>
    %1 = vector.multi_reduction <add>, %0, %cst [1] : vector<8x32xf32> to vector<8xf32>
    %2 = vector.shape_cast %1 : vector<8xf32> to vector<8x1xf32>
    %3 = arith.mulf %0, %0 : vector<8x32xf32>
    %cst_1 = arith.constant dense<0.000000e+00> : vector<8xf32>
    %4 = vector.multi_reduction <add>, %3, %cst_1 [1] : vector<8x32xf32> to vector<8xf32>
    %5 = vector.shape_cast %4 : vector<8xf32> to vector<8x1xf32>
    %cst_2 = arith.constant 3.125000e-02 : f32
    %6 = vector.broadcast %cst_2 : f32 to vector<8x1xf32>
    %7 = arith.mulf %2, %6 : vector<8x1xf32>
    %cst_3 = arith.constant 3.125000e-02 : f32
    %8 = vector.broadcast %cst_3 : f32 to vector<8x1xf32>
    %9 = arith.mulf %5, %8 : vector<8x1xf32>
    %10 = arith.mulf %7, %7 : vector<8x1xf32>
    %11 = arith.subf %9, %10 : vector<8x1xf32>
    %cst_4 = arith.constant 0.000000e+00 : f32
    %12 = vector.broadcast %cst_4 : f32 to vector<8x1xf32>
    %13 = arith.maximumf %11, %12 : vector<8x1xf32>
    %cst_5 = arith.constant 9.99999974E-6 : f32
    %14 = vector.broadcast %cst_5 : f32 to vector<8x1xf32>
    %15 = arith.addf %13, %14 : vector<8x1xf32>
    %16 = math.rsqrt %15 : vector<8x1xf32>
    %c0_6 = arith.constant 0 : index
    %c0_7 = arith.constant 0 : index
    %17 = vector.load %arg2[%c0_6, %c0_7] : memref<1x32xf32, #tpu.memory_space<vmem>>, vector<1x32xf32>
    %c0_8 = arith.constant 0 : index
    %c0_9 = arith.constant 0 : index
    %18 = vector.load %arg3[%c0_8, %c0_9] : memref<1x32xf32, #tpu.memory_space<vmem>>, vector<1x32xf32>
    %19 = vector.broadcast %17 : vector<1x32xf32> to vector<8x32xf32>
    %20 = vector.broadcast %16 : vector<8x1xf32> to vector<8x32xf32>
    %21 = arith.mulf %19, %20 : vector<8x32xf32>
    %22 = arith.mulf %0, %21 : vector<8x32xf32>
    %23 = vector.broadcast %7 : vector<8x1xf32> to vector<8x32xf32>
    %24 = arith.mulf %23, %21 : vector<8x32xf32>
    %25 = vector.broadcast %18 : vector<1x32xf32> to vector<8x32xf32>
    %26 = arith.subf %25, %24 : vector<8x32xf32>
    %27 = arith.addf %22, %26 : vector<8x32xf32>
    %cst_10 = arith.constant 0.000000e+00 : f32
    %28 = vector.broadcast %cst_10 : f32 to vector<8x32xf32>
    %29 = arith.maximumf %27, %28 : vector<8x32xf32>
    %c0_11 = arith.constant 0 : index
    %c0_12 = arith.constant 0 : index
    %30 = vector.load %arg4[%c0_11, %c0_12] : memref<32x4xf32, #tpu.memory_space<vmem>>, vector<32x4xf32>
    %cst_13 = arith.constant dense<0.000000e+00> : vector<8x4xf32>
    %31 = tpu.matmul %29, %30, %cst_13 {dimension_numbers = #tpu.dot_dimension_numbers<[1], [0], [0], [1], [0, 0, 1, 1], [], []>} : vector<8x32xf32>, vector<32x4xf32>, vector<8x4xf32> -> vector<8x4xf32>
    %c0_14 = arith.constant 0 : index
    %c0_15 = arith.constant 0 : index
    %32 = vector.load %arg5[%c0_14, %c0_15] : memref<1x4xf32, #tpu.memory_space<vmem>>, vector<1x4xf32>
    %33 = vector.broadcast %32 : vector<1x4xf32> to vector<8x4xf32>
    %34 = arith.addf %31, %33 : vector<8x4xf32>
    %35 = arith.negf %34 : vector<8x4xf32>
    %36 = math.exp %35 : vector<8x4xf32>
    %cst_16 = arith.constant 1.000000e+00 : f32
    %37 = vector.broadcast %cst_16 : f32 to vector<8x4xf32>
    %38 = arith.addf %37, %36 : vector<8x4xf32>
    %39 = arith.divf %37, %38 : vector<8x4xf32>
    %c0_17 = arith.constant 0 : index
    %c0_18 = arith.constant 0 : index
    %40 = vector.load %arg6[%c0_17, %c0_18] : memref<8x4xf32, #tpu.memory_space<vmem>>, vector<8x4xf32>
    tpu.vector_store %arg6[%c0_17, %c0_18], %39 {strides = array<i32>} : memref<8x4xf32, #tpu.memory_space<vmem>>, vector<8x4xf32>,
    return
  }
  func.func @transform_0(%arg0: i32) -> (i32, i32) {
    %c0_i32 = arith.constant 0 : i32
    %c0_i32_0 = arith.constant 0 : i32
    return %arg0, %c0_i32 : i32, i32
  }
  func.func @transform_1(%arg0: i32) -> (i32, i32) {
    %c0_i32 = arith.constant 0 : i32
    %c0_i32_0 = arith.constant 0 : i32
    %c0_i32_1 = arith.constant 0 : i32
    return %c0_i32, %c0_i32_0 : i32, i32
  }
  func.func @transform_2(%arg0: i32) -> (i32, i32) {
    %c0_i32 = arith.constant 0 : i32
    %c0_i32_0 = arith.constant 0 : i32
    %c0_i32_1 = arith.constant 0 : i32
    return %c0_i32, %c0_i32_0 : i32, i32
  }
  func.func @transform_3(%arg0: i32) -> (i32, i32) {
    %c0_i32 = arith.constant 0 : i32
    %c0_i32_0 = arith.constant 0 : i32
    %c0_i32_1 = arith.constant 0 : i32
    return %c0_i32, %c0_i32_0 : i32, i32
  }
  func.func @transform_4(%arg0: i32) -> (i32, i32) {
    %c0_i32 = arith.constant 0 : i32
    %c0_i32_0 = arith.constant 0 : i32
    %c0_i32_1 = arith.constant 0 : i32
    return %c0_i32, %c0_i32_0 : i32, i32
  }
  func.func @transform_5(%arg0: i32) -> (i32, i32) {
    %c0_i32 = arith.constant 0 : i32
    %c0_i32_0 = arith.constant 0 : i32
    return %arg0, %c0_i32 : i32, i32
  }
}

</mosaic_0001>

<bundles_post_ra>
// kernel: tpu_custom_call.1
= control target key start
LH: loop header
LB: loop body
LE: loop exit
PB: predicated region body
PF: predicated region fallthrough
CT: control target
= control target key end

     0   :  { %vm21_vm0 = vcmask 261120   ;;  %v188_v4 = vmov 0.0|0.0   ;;  %vm189_vm1 = vmmov 0   ;;  %v190_v8 = vmov 0.0   ;;  %s251_s0 = inlined_call_operand.vmem [shape: f32[8,32], index: 0, kind: input, shape index: {}]   ;;  %s252_s3 = inlined_call_operand.vmem [shape: f32[32,4], index: 3, kind: input, shape index: {}]   ;;  %s253_s1 = inlined_call_operand.vmem [shape: f32[1,32], index: 1, kind: input, shape index: {}]   ;;  %s254_s2 = inlined_call_operand.vmem [shape: f32[1,32], index: 2, kind: input, shape index: {}]   ;;  %s255_s4 = inlined_call_operand.vmem [shape: f32[1,4], index: 4, kind: input, shape index: {}]   ;;  %s256_s5 = inlined_call_operand.vmem [shape: f32[8,4], index: 5, kind: output, shape index: {}]  }
   0x1   :  { %v20_v0 = vld [vmem:[%s251_s0] sm:$0xff]  ;;  %173 = vmatprep.subr.bf16.mxu0 %v188_v4  ;;  %v57_v6 = vld [vmem:[%s252_s3 + $0x8] sm:$0xff]  ;;  %v58_v7 = vld [vmem:[%s252_s3 + $0x10] sm:$0xff]  ;;  %170 = vmatprep.mubr.msk.f32.mxu0 %vm189_vm1, %v190_v8  ;;  %vm146_vm2 = vcmask 31744  }
   0x2   :  { %v22_v1 = vsel %vm21_vm0, %v20_v0, 0.0  ;;  %v25_v2 = vmul.f32 %v20_v0, %v20_v0  ;;  %v56_v5 = vld [vmem:[%s252_s3] sm:$0xff]  ;;  %v59_v10 = vld [vmem:[%s252_s3 + $0x18] sm:$0xff] }
   0x3   :  { %23 = vadd.xlane.f32.xlu0 %v22_v1  ;;  %v174_v9 = vpack.c.bf16 %v57_v6, %v56_v5  ;;  %v177_v11 = vpack.c.bf16 %v59_v10, %v58_v7  ;;  %v152_v20 = vld [vmem:[%s253_s1] ss:$0 sm:$0xff] }
   0x4   :  { %v26_v3 = vsel %vm21_vm0, %v25_v2, 0.0  ;;  %v153_v23 = vld [vmem:[%s254_s2] ss:$0 sm:$0xff] }
   0x5   :  { %175 = vmatpush3.bf16.msra.mxu0 %v174_v9  ;;  %v154_v29 = vld [vmem:[%s255_s4] ss:$0 sm:$0xff] }
   0x6   :  { %176 = vmatprep.subr.bf16.mxu0 %v188_v4 }
   0x7   :  { %27 = vadd.xlane.f32.xlu0 %v26_v3 }
   0x9   :  { %178 = vmatpush3.bf16.msra.mxu0 %v177_v11 }
  0x90   :  { %v24_v12 = vpop.xlane.xlu0 %23 }
  0x91   :  { %v29_v13 = vmul.f32 0.03125, %v24_v12 }
  0x93   :  { %v31_v15 = vmul.f32 %v29_v13, %v29_v13 }
  0x94   :  { %v28_v14 = vpop.xlane.xlu0 %27 }
  0x95   :  { %v30_v16 = vmul.f32 0.03125, %v28_v14 }
  0x97   :  { %v32_v17 = vsub.f32 %v30_v16, %v31_v15 }
  0x99   :  { %v33_v18 = vmax.f32 %v32_v17, 0.0 }
  0x9b   :  { %v34_v19 = vadd.f32 1e-05, %v33_v18 }
  0x9d   :  { %182 = vrsqrt.f32 %v34_v19 }
  0xa7   :  { %v183_v21 = vpop.eup %182 }
  0xa8   :  { %v44_v22 = vmul.f32 %v183_v21, %v152_v20 }
  0xaa   :  { %v46_v24 = vmul.f32 %v44_v22, %v29_v13  ;;  %v45_v25 = vmul.f32 %v44_v22, %v20_v0 }
  0xac   :  { %v53_v26 = vsub.f32 %v153_v23, %v46_v24 }
  0xae   :  { %v54_v27 = vadd.f32 %v53_v26, %v45_v25 }
  0xb0   :  { %v55_v28 = vmax.f32 %v54_v27, 0.0 }
  0xb2   :  { %171 = vmatmul.mubr.msk.f32.vlgmr.msra.gmra.mrb[0].mxu0 %vm21_vm0, %v55_v28 }
 0x185   :  { %v136_v30 = vpop.f32.mrb[0].mxu0 }
 0x186   :  { %v137_v31 = vadd.f32 %v154_v29, %v136_v30  ;;  %v172_v32 = vpop.f32.mrb[1].mxu0 }
 0x188   :  { %v156_v33 = vmul.f32 -1.442695, %v137_v31 }
 0x18a   :  { %184 = vpow2.f32 %v156_v33 }
 0x194   :  { %v185_v34 = vpop.eup %184 }
 0x195   :  { %v143_v35 = vadd.f32 1.0, %v185_v34 }
 0x197   :  { %186 = vrcp.f32 %v143_v35 }
 0x1a1   :  { %v187_v36 = vpop.eup %186 }
 0x1a2   :  { %147 = vst.msk [vmem:[%s256_s5] sm:$0xff] %vm146_vm2, %v187_v36 }

</bundles_post_ra>
